<compile_context>
chip_gen: v5e
topology: v5e:2x2
jax: 0.10.0
libtpu: 0.0.40
codegen_flags: <defaults>
</compile_context>

<pallas_src>
import functools

import jax
import jax.numpy as jnp
from jax.experimental import pallas as pl
from jax.experimental.pallas import tpu as pltpu


# ------------------------------ small helpers ------------------------------ #

def _round_up(x, m):
    return (x + m - 1) // m * m


def _pick_tile(dim, cands):
    # All padded dims are multiples of 128 and 128 is always a candidate, so the
    # fallback is unreachable in practice.
    for c in cands:
        if dim % c == 0:
            return c
    return 128 if dim % 128 == 0 else dim


# --------------------------- fused conv matmul ------------------------------ #

def _conv_mm_kernel(a_ref, b_ref, *rest, relu_out, with_stats, b_resident, tk):
    if with_stats:
        o_ref, stat_ref, acc_ref = rest
    else:
        o_ref, acc_ref = rest
        stat_ref = None

    k = pl.program_id(3)

    @pl.when(k == 0)
    def _init():
        acc_ref[...] = jnp.zeros_like(acc_ref)

    a = a_ref[0]                                   # (tm, tk) bf16
    if b_resident:
        # Weights stay VMEM-resident across the whole (i, j, k) sub-grid; pick the
        # j-th N tile (leading dim) and slice the k-th K chunk (sublane-aligned).
        j = pl.program_id(2)
        b = b_ref[0, j, pl.ds(pl.multiple_of(k * tk, tk), tk), :]
    else:
        b = b_ref[0]                               # (tk, tn) bf16
    acc_ref[...] += jnp.dot(a, b, preferred_element_type=jnp.float32)

    @pl.when(k == pl.num_programs(3) - 1)
    def _finalize():
        res = acc_ref[...]                         # (tm, tn) f32
        if relu_out:                               # ReLU fused on output
            res = jnp.maximum(res, 0.0)
        o_ref[0] = res.astype(o_ref.dtype)
        if with_stats:                             # per-channel BN partial stats
            tn_ = res.shape[1]
            s = jnp.sum(res, axis=0, keepdims=True)          # (1, tn)
            q = jnp.sum(res * res, axis=0, keepdims=True)    # (1, tn)
            row = jax.lax.broadcasted_iota(jnp.int32, (8, tn_), 0)
            stat_ref[...] = jnp.where(row < 4,
                                      jnp.broadcast_to(s, (8, tn_)),
                                      jnp.broadcast_to(q, (8, tn_)))


def fused_conv_matmul(a, b, *, relu_out=False, with_stats=False,
                      out_dtype=jnp.bfloat16):
    """Batched tiled matmul: a (B, M, K) @ b (B, K, N) -> (B, M_pad, N_pad).

    If with_stats, also returns per-(batch, m-block) channel partials shaped
    (num_blocks, 8, N_pad): rows 0-3 hold the column sums, rows 4-7 the column
    sums of squares (computed from the f32 accumulators).
    """
    Bb, M, K = a.shape
    Bb2, K2, Nc = b.shape
    assert Bb == Bb2 and K == K2
    out_itemsize = jnp.dtype(out_dtype).itemsize

    M_pad = _round_up(M, 128)
    K_pad = _round_up(K, 128)
    N_pad = _round_up(Nc, 128)

    # Big tiles amortize the ~0.35 us/step pipeline overhead; 256/512 lane tiles
    # feed the 256x256 MXUs (v6e/v7x) at full width.
    tm = _pick_tile(M_pad, (512, 256, 128))
    tn = _pick_tile(N_pad, (512, 256, 128))
    tk = _pick_tile(K_pad, (2048, 1024, 512, 256, 128))

    # v7x megacore: guarantee >=2 independent (parallel) blocks when possible.
    if Bb * (M_pad // tm) * (N_pad // tn) < 2 and M_pad >= 16:
        tm = M_pad // 2                            # M_pad is a 128-multiple -> tm % 8 == 0

    # Keep the (small) weight operand fully VMEM-resident when it fits comfortably.
    b_resident = 2 * K_pad * N_pad * 2 <= 4 * 1024 * 1024

    # Clamp the double-buffered working set to ~20 MiB (fits v7x's 64 MiB VMEM
    # with headroom for compiler scratch under a 32 MiB scoped limit).
    budget = 20 * 1024 * 1024

    def _footprint(tm_, tk_, tn_):
        a_b = 2 * tm_ * tk_ * 2
        b_b = 2 * K_pad * N_pad * 2 if b_resident else 2 * tk_ * tn_ * 2
        o_b = 2 * tm_ * tn_ * out_itemsize
        st_b = 2 * 8 * tn_ * 4 if with_stats else 0
        return a_b + b_b + o_b + tm_ * tn_ * 4 + st_b

    while _footprint(tm, tk, tn) > budget:
        if tk > 128:
            tk //= 2
        elif tn > 128:
            tn //= 2
        elif tm > 128:
            tm //= 2
        else:
            break

    n_m, n_n, n_k = M_pad // tm, N_pad // tn, K_pad // tk

    a_p = jnp.pad(a, ((0, 0), (0, M_pad - M), (0, K_pad - K))).astype(jnp.bfloat16)
    b_p = jnp.pad(b, ((0, 0), (0, K_pad - K), (0, N_pad - Nc))).astype(jnp.bfloat16)

    if b_resident:
        # (Bb, n_n, K_pad, tn): N pre-split so the kernel never needs a dynamic
        # lane-dim slice; index_map is constant in (i, j, k) -> one DMA per batch.
        b_in = b_p.reshape(Bb, K_pad, n_n, tn).transpose(0, 2, 1, 3)
        b_spec = pl.BlockSpec((1, n_n, K_pad, tn), lambda bi, i, j, k: (bi, 0, 0, 0))
    else:
        b_in = b_p
        b_spec = pl.BlockSpec((1, tk, tn), lambda bi, i, j, k: (bi, k, j))

    kernel = functools.partial(_conv_mm_kernel, relu_out=relu_out,
                               with_stats=with_stats, b_resident=b_resident, tk=tk)

    out_shape = [jax.ShapeDtypeStruct((Bb, M_pad, N_pad), out_dtype)]
    out_specs = [pl.BlockSpec((1, tm, tn), lambda bi, i, j, k: (bi, i, j))]
    if with_stats:
        out_shape.append(jax.ShapeDtypeStruct((Bb * n_m * 8, N_pad), jnp.float32))
        out_specs.append(pl.BlockSpec((8, tn),
                                      lambda bi, i, j, k: (bi * n_m + i, j)))

    # Advisory cost from the true (unpadded) problem size.
    cost = pl.CostEstimate(
        flops=2 * Bb * M * K * Nc,
        transcendentals=0,
        bytes_accessed=Bb * (M * K + K * Nc) * 2 + Bb * M * Nc * out_itemsize)

    res = pl.pallas_call(
        kernel,
        out_shape=tuple(out_shape) if with_stats else out_shape[0],
        grid_spec=pltpu.PrefetchScalarGridSpec(
            num_scalar_prefetch=0,
            grid=(Bb, n_m, n_n, n_k),
            in_specs=[pl.BlockSpec((1, tm, tk), lambda bi, i, j, k: (bi, i, k)),
                      b_spec],
            out_specs=tuple(out_specs) if with_stats else out_specs[0],
            scratch_shapes=[pltpu.VMEM((tm, tn), jnp.float32)]),
        compiler_params=pltpu.CompilerParams(
            dimension_semantics=("parallel", "parallel", "parallel", "arbitrary"),
            vmem_limit_bytes=32 * 1024 * 1024),
        cost_estimate=cost,
    )(a_p, b_in)

    if with_stats:
        out, stats = res
        return out, stats.reshape(Bb * n_m, 8, N_pad)
    return res


# ------------------------- im2col glue (NHWC, concat-only) ------------------ #

def _im2col_down(x_nhwc):
    """Conv2d(k=4, s=2, p=1) patches. (N,H,W,C) -> (1, N*Ho*Wo, 16*C)."""
    N, H, W, C = x_nhwc.shape
    Ho, Wo = H // 2, W // 2
    xp = jnp.pad(x_nhwc, ((0, 0), (1, 1), (1, 1), (0, 0)))
    taps = [xp[:, kh:kh + 2 * Ho:2, kw:kw + 2 * Wo:2, :]
            for kh in range(4) for kw in range(4)]
    patches = jnp.concatenate(taps, axis=-1)              # (N, Ho, Wo, 16*C)
    return patches.reshape(1, N * Ho * Wo, 16 * C)


def _up_phase_taps(y_nhwc):
    """ConvTranspose2d(k=4,s=2,p=1) as 4 output-phase 2x2 sub-convolutions.
    Returns list of 4 (N*Ho*Wo, 4*C) patch matrices; phase index = ph*2 + pw."""
    N, Ho, Wo, C = y_nhwc.shape
    yp = jnp.pad(y_nhwc, ((0, 0), (1, 1), (1, 1), (0, 0)))
    phases = []
    for ph in range(2):
        for pw in range(2):
            taps = [yp[:, ph + dh:ph + dh + Ho, pw + dw:pw + dw + Wo, :]
                    for dh in range(2) for dw in range(2)]
            phases.append(jnp.concatenate(taps, axis=-1).reshape(N * Ho * Wo, 4 * C))
    return phases


def _up_phase_weight_mats(w_up):
    """Phase-reordered ConvTranspose2d weights (inner,outer,4,4) -> 4 x (4*inner, outer).
    Output position oh = 2*ih + kh - 1 => phase ph uses kh = 3 - ph - 2*dh."""
    mats = []
    for ph in range(2):
        for pw in range(2):
            taps = [w_up[:, :, 3 - ph - 2 * dh, 3 - pw - 2 * dw]
                    for dh in range(2) for dw in range(2)]      # each (inner, outer)
            mats.append(jnp.concatenate(taps, axis=0))           # (4*inner, outer)
    return mats


# ------------------------------ forward pass -------------------------------- #

def unet_innermost_forward(x, params):
    N, C_in, H, W = x.shape
    w_down = params["w_down"]        # (inner, C_in, 4, 4)   Conv2d OIHW
    w_up = params["w_up"]            # (inner, outer, 4, 4)  ConvTranspose2d
    gamma, beta = params["gamma"], params["beta"]
    inner = w_down.shape[0]
    outer = w_up.shape[1]
    Ho, Wo = H // 2, W // 2
    M = N * Ho * Wo

    x_nhwc = jnp.transpose(x, (0, 2, 3, 1))
    # LeakyReLU(0.2) hoisted out of the matmul inner loop (f32, fuses into the
    # im2col pad/slice/concat pass).
    x_act = jnp.where(x_nhwc >= 0.0, x_nhwc, 0.2 * x_nhwc)

    # ---- down path: Conv2d(4,2,1) as one matmul, up-path ReLU fused ---------
    a_down = _im2col_down(x_act)                                    # (1, M, 16*C_in)
    b_down = jnp.transpose(w_down, (2, 3, 1, 0)).reshape(1, 16 * C_in, inner)
    y_pad = fused_conv_matmul(a_down, b_down, relu_out=True,
                              out_dtype=jnp.bfloat16)
    y = y_pad[0, :M, :inner].reshape(N, Ho, Wo, inner)              # NHWC, bf16

    # ---- up path: ConvTranspose2d(4,2,1) as 4 phase sub-convs ---------------
    phases = _up_phase_taps(y)
    mats = _up_phase_weight_mats(w_up)
    pack = 4 * outer <= 128          # lane-pack phases when outer_nc is small
    if pack:
        # A = [A_0 | A_1 | A_2 | A_3]  (M, 16*inner);  B = blockdiag(B_0..B_3)
        # (16*inner, 4*outer) -> lane-dense output (M, 4*outer), no per-phase padding.
        a_up = jnp.concatenate(phases, axis=-1)[None]
        b_up = jnp.concatenate(
            [jnp.pad(mats[p], ((4 * inner * p, 4 * inner * (3 - p)), (0, 0)))
             for p in range(4)], axis=-1)[None]
    else:
        a_up = jnp.stack(phases, axis=0)                            # (4, M, 4*inner)
        b_up = jnp.stack(mats, axis=0)                              # (4, 4*inner, outer)
    z_pad, stats = fused_conv_matmul(a_up, b_up, with_stats=True,
                                     out_dtype=jnp.bfloat16)

    # ---- BatchNorm2d (training-mode batch statistics) -----------------------
    # Per-channel sum / sum-of-squares come from the f32 matmul accumulators.
    tot_sum = stats[:, 0, :].sum(axis=0)
    tot_sq = stats[:, 4, :].sum(axis=0)
    if pack:
        tot_sum = tot_sum[:4 * outer].reshape(4, outer).sum(axis=0)
        tot_sq = tot_sq[:4 * outer].reshape(4, outer).sum(axis=0)
    else:
        tot_sum = tot_sum[:outer]
        tot_sq = tot_sq[:outer]
    count = float(N * H * W)
    mean = tot_sum / count
    var = tot_sq / count - mean * mean                              # biased (training)
    scale = gamma.astype(jnp.float32) * jax.lax.rsqrt(var + 1e-5)
    shift = beta.astype(jnp.float32) - mean * scale

    # ---- BN scale/shift fused into the de-interleave / skip-concat epilogue -
    if pack:
        z = z_pad[0, :M, :4 * outer].astype(jnp.float32)
        zn = z * jnp.tile(scale, 4) + jnp.tile(shift, 4)
        zn = zn.reshape(N, Ho, Wo, 2, 2, outer).transpose(0, 1, 3, 2, 4, 5)
    else:
        z = z_pad[:, :M, :outer].astype(jnp.float32)
        zn = z * scale + shift
        zn = zn.reshape(2, 2, N, Ho, Wo, outer).transpose(2, 3, 0, 4, 1, 5)
    zn = zn.reshape(N, H, W, outer).transpose(0, 3, 1, 2)           # NCHW
    return jnp.concatenate([x, zn], axis=1)


# ---------------------------- pure-JAX reference ----------------------------- #

def reference_forward(x, params):
    w_down, w_up = params["w_down"], params["w_up"]
    gamma, beta = params["gamma"], params["beta"]
    y1 = jnp.where(x >= 0.0, x, 0.2 * x)
    y2 = jax.lax.conv_general_dilated(
        y1, w_down, (2, 2), ((1, 1), (1, 1)),
        dimension_numbers=("NCHW", "OIHW", "NCHW"))
    y3 = jnp.maximum(y2, 0.0)
    wu_conv = w_up[:, :, ::-1, ::-1].transpose(1, 0, 2, 3)
    y4 = jax.lax.conv_general_dilated(
        y3, wu_conv, (1, 1), ((2, 2), (2, 2)), lhs_dilation=(2, 2),
        dimension_numbers=("NCHW", "OIHW", "NCHW"))
    mean = y4.mean(axis=(0, 2, 3), keepdims=True)
    var = ((y4 - mean) ** 2).mean(axis=(0, 2, 3), keepdims=True)
    y5 = (y4 - mean) * jax.lax.rsqrt(var + 1e-5)
    y5 = y5 * gamma.reshape(1, -1, 1, 1) + beta.reshape(1, -1, 1, 1)
    return jnp.concatenate([x, y5], axis=1)


# ----------------------------------- main ------------------------------------ #

if __name__ == "__main__":
    key = jax.random.PRNGKey(0)
    N, outer_nc, inner_nc, H, W = 2, 4, 8, 16, 16
    input_nc = outer_nc  # input_nc=None -> outer_nc
    k1, k2, k3, k4, k5 = jax.random.split(key, 5)

    x = jax.random.normal(k1, (N, input_nc, H, W), jnp.float32)
    params = {
        "w_down": 0.1 * jax.random.normal(k2, (inner_nc, input_nc, 4, 4), jnp.float32),
        "w_up":   0.1 * jax.random.normal(k3, (inner_nc, outer_nc, 4, 4), jnp.float32),
        "gamma":  1.0 + 0.1 * jax.random.normal(k4, (outer_nc,), jnp.float32),
        "beta":   0.1 * jax.random.normal(k5, (outer_nc,), jnp.float32),
    }

    out = jax.jit(unet_innermost_forward)(x, params)
    jax.block_until_ready(out)

    ref = reference_forward(x, params)
    assert out.shape == (N, 2 * outer_nc, H, W), out.shape
    max_err = float(jnp.max(jnp.abs(out - ref)))
    # bf16 MXU operands / bf16 z with f32 accumulation -> relaxed tolerance.
    assert max_err < 5e-2, f"mismatch vs reference: {max_err}"

    print("KERNEL_OK")
</pallas_src>

<mosaic_0001>
module attributes {stable_mosaic.version = 11 : i64} {
  func.func @_conv_mm_kernel(%arg0: i32, %arg1: i32, %arg2: i32, %arg3: i32, %arg4: memref<1x64x128xbf16, #tpu.memory_space<vmem>>, %arg5: memref<1x1x128x128xbf16, #tpu.memory_space<vmem>>, %arg6: memref<1x64x128xbf16, #tpu.memory_space<vmem>>, %arg7: memref<64x128xf32, #tpu.memory_space<vmem>>) attributes {dimension_semantics = [#tpu.dimension_semantics<parallel>, #tpu.dimension_semantics<parallel>, #tpu.dimension_semantics<parallel>, #tpu.dimension_semantics<arbitrary>], iteration_bounds = array<i64: 1, 2, 1, 1>, scalar_prefetch = 0 : i64, scratch_operands = 1 : i64, tpu.core_type = #tpu.core_type<tc>, window_params = [{transform_indices = @transform_0, window_bounds = array<i64: 1, 64, 128>}, {transform_indices = @transform_1, window_bounds = array<i64: 1, 1, 128, 128>}, {transform_indices = @transform_2, window_bounds = array<i64: 1, 64, 128>}]} {
    %c0_i32 = arith.constant 0 : i32
    %0 = arith.cmpi eq, %arg3, %c0_i32 : i32
    %1 = arith.extui %0 : i1 to i32
    %c0_i32_0 = arith.constant 0 : i32
    %2 = arith.cmpi ne, %1, %c0_i32_0 : i32
    scf.if %2 {
      %cst_11 = arith.constant 0.000000e+00 : f32
      %18 = vector.broadcast %cst_11 : f32 to vector<64x128xf32>
      %c0_12 = arith.constant 0 : index
      %c0_13 = arith.constant 0 : index
      %19 = vector.load %arg7[%c0_12, %c0_13] : memref<64x128xf32, #tpu.memory_space<vmem>>, vector<64x128xf32>
      tpu.vector_store %arg7[%c0_12, %c0_13], %18 {strides = array<i32>} : memref<64x128xf32, #tpu.memory_space<vmem>>, vector<64x128xf32>,
    } else {
    }
    %c0 = arith.constant 0 : index
    %c0_1 = arith.constant 0 : index
    %c0_2 = arith.constant 0 : index
    %3 = vector.load %arg4[%c0, %c0_1, %c0_2] : memref<1x64x128xbf16, #tpu.memory_space<vmem>>, vector<1x64x128xbf16>
    %4 = vector.shape_cast %3 : vector<1x64x128xbf16> to vector<64x128xbf16>
    %c128_i32 = arith.constant 128 : i32
    %5 = arith.muli %arg3, %c128_i32 : i32
    %6 = tpu.assume_multiple %5, 128 : i32
    %c0_3 = arith.constant 0 : index
    %7 = arith.index_cast %arg2 : i32 to index
    %8 = arith.index_cast %6 : i32 to index
    %c0_4 = arith.constant 0 : index
    %9 = vector.load %arg5[%c0_3, %7, %8, %c0_4] : memref<1x1x128x128xbf16, #tpu.memory_space<vmem>>, vector<1x1x128x128xbf16>
    %10 = vector.shape_cast %9 : vector<1x1x128x128xbf16> to vector<128x128xbf16>
    %c0_5 = arith.constant 0 : index
    %c0_6 = arith.constant 0 : index
    %11 = vector.load %arg7[%c0_5, %c0_6] : memref<64x128xf32, #tpu.memory_space<vmem>>, vector<64x128xf32>
    %cst = arith.constant dense<0.000000e+00> : vector<64x128xf32>
    %12 = tpu.matmul %4, %10, %cst {dimension_numbers = #tpu.dot_dimension_numbers<[1], [0], [0], [1], [0, 0, 1, 1], [], []>} : vector<64x128xbf16>, vector<128x128xbf16>, vector<64x128xf32> -> vector<64x128xf32>
    %13 = arith.addf %11, %12 : vector<64x128xf32>
    %c0_7 = arith.constant 0 : index
    %c0_8 = arith.constant 0 : index
    %14 = vector.load %arg7[%c0_7, %c0_8] : memref<64x128xf32, #tpu.memory_space<vmem>>, vector<64x128xf32>
    tpu.vector_store %arg7[%c0_7, %c0_8], %13 {strides = array<i32>} : memref<64x128xf32, #tpu.memory_space<vmem>>, vector<64x128xf32>,
    %c0_i32_9 = arith.constant 0 : i32
    %15 = arith.cmpi eq, %arg3, %c0_i32_9 : i32
    %16 = arith.extui %15 : i1 to i32
    %c0_i32_10 = arith.constant 0 : i32
    %17 = arith.cmpi ne, %16, %c0_i32_10 : i32
    scf.if %17 {
      %c0_11 = arith.constant 0 : index
      %c0_12 = arith.constant 0 : index
      %18 = vector.load %arg7[%c0_11, %c0_12] : memref<64x128xf32, #tpu.memory_space<vmem>>, vector<64x128xf32>
      %cst_13 = arith.constant 0.000000e+00 : f32
      %19 = vector.broadcast %cst_13 : f32 to vector<64x128xf32>
      %20 = arith.maximumf %18, %19 : vector<64x128xf32>
      %21 = arith.truncf %20 : vector<64x128xf32> to vector<64x128xbf16>
      %c0_14 = arith.constant 0 : index
      %c0_15 = arith.constant 0 : index
      %c0_16 = arith.constant 0 : index
      %22 = vector.load %arg6[%c0_14, %c0_15, %c0_16] : memref<1x64x128xbf16, #tpu.memory_space<vmem>>, vector<1x64x128xbf16>
      %23 = vector.shape_cast %22 : vector<1x64x128xbf16> to vector<64x128xbf16>
      %24 = vector.shape_cast %21 : vector<64x128xbf16> to vector<1x64x128xbf16>
      tpu.vector_store %arg6[%c0_14, %c0_15, %c0_16], %24 {strides = array<i32>} : memref<1x64x128xbf16, #tpu.memory_space<vmem>>, vector<1x64x128xbf16>,
    } else {
    }
    return
  }
  func.func @transform_0(%arg0: i32, %arg1: i32, %arg2: i32, %arg3: i32) -> (i32, i32, i32) {
    %c0_i32 = arith.constant 0 : i32
    return %arg0, %arg1, %arg3 : i32, i32, i32
  }
  func.func @transform_1(%arg0: i32, %arg1: i32, %arg2: i32, %arg3: i32) -> (i32, i32, i32, i32) {
    %c0_i32 = arith.constant 0 : i32
    %c0_i32_0 = arith.constant 0 : i32
    %c0_i32_1 = arith.constant 0 : i32
    %c0_i32_2 = arith.constant 0 : i32
    return %arg0, %c0_i32, %c0_i32_0, %c0_i32_1 : i32, i32, i32, i32
  }
  func.func @transform_2(%arg0: i32, %arg1: i32, %arg2: i32, %arg3: i32) -> (i32, i32, i32) {
    %c0_i32 = arith.constant 0 : i32
    return %arg0, %arg1, %arg2 : i32, i32, i32
  }
}

module attributes {stable_mosaic.version = 11 : i64} {
  func.func @_conv_mm_kernel(%arg0: i32, %arg1: i32, %arg2: i32, %arg3: i32, %arg4: memref<1x64x128xbf16, #tpu.memory_space<vmem>>, %arg5: memref<1x1x128x128xbf16, #tpu.memory_space<vmem>>, %arg6: memref<1x64x128xbf16, #tpu.memory_space<vmem>>, %arg7: memref<8x128xf32, #tpu.memory_space<vmem>>, %arg8: memref<64x128xf32, #tpu.memory_space<vmem>>) attributes {dimension_semantics = [#tpu.dimension_semantics<parallel>, #tpu.dimension_semantics<parallel>, #tpu.dimension_semantics<parallel>, #tpu.dimension_semantics<arbitrary>], iteration_bounds = array<i64: 1, 2, 1, 1>, scalar_prefetch = 0 : i64, scratch_operands = 1 : i64, tpu.core_type = #tpu.core_type<tc>, window_params = [{transform_indices = @transform_0, window_bounds = array<i64: 1, 64, 128>}, {transform_indices = @transform_1, window_bounds = array<i64: 1, 1, 128, 128>}, {transform_indices = @transform_2, window_bounds = array<i64: 1, 64, 128>}, {transform_indices = @transform_3, window_bounds = array<i64: 8, 128>}]} {
    %c0_i32 = arith.constant 0 : i32
    %0 = arith.cmpi eq, %arg3, %c0_i32 : i32
    %1 = arith.extui %0 : i1 to i32
    %c0_i32_0 = arith.constant 0 : i32
    %2 = arith.cmpi ne, %1, %c0_i32_0 : i32
    scf.if %2 {
      %cst_11 = arith.constant 0.000000e+00 : f32
      %18 = vector.broadcast %cst_11 : f32 to vector<64x128xf32>
      %c0_12 = arith.constant 0 : index
      %c0_13 = arith.constant 0 : index
      %19 = vector.load %arg8[%c0_12, %c0_13] : memref<64x128xf32, #tpu.memory_space<vmem>>, vector<64x128xf32>
      tpu.vector_store %arg8[%c0_12, %c0_13], %18 {strides = array<i32>} : memref<64x128xf32, #tpu.memory_space<vmem>>, vector<64x128xf32>,
    } else {
    }
    %c0 = arith.constant 0 : index
    %c0_1 = arith.constant 0 : index
    %c0_2 = arith.constant 0 : index
    %3 = vector.load %arg4[%c0, %c0_1, %c0_2] : memref<1x64x128xbf16, #tpu.memory_space<vmem>>, vector<1x64x128xbf16>
    %4 = vector.shape_cast %3 : vector<1x64x128xbf16> to vector<64x128xbf16>
    %c128_i32 = arith.constant 128 : i32
    %5 = arith.muli %arg3, %c128_i32 : i32
    %6 = tpu.assume_multiple %5, 128 : i32
    %c0_3 = arith.constant 0 : index
    %7 = arith.index_cast %arg2 : i32 to index
    %8 = arith.index_cast %6 : i32 to index
    %c0_4 = arith.constant 0 : index
    %9 = vector.load %arg5[%c0_3, %7, %8, %c0_4] : memref<1x1x128x128xbf16, #tpu.memory_space<vmem>>, vector<1x1x128x128xbf16>
    %10 = vector.shape_cast %9 : vector<1x1x128x128xbf16> to vector<128x128xbf16>
    %c0_5 = arith.constant 0 : index
    %c0_6 = arith.constant 0 : index
    %11 = vector.load %arg8[%c0_5, %c0_6] : memref<64x128xf32, #tpu.memory_space<vmem>>, vector<64x128xf32>
    %cst = arith.constant dense<0.000000e+00> : vector<64x128xf32>
    %12 = tpu.matmul %4, %10, %cst {dimension_numbers = #tpu.dot_dimension_numbers<[1], [0], [0], [1], [0, 0, 1, 1], [], []>} : vector<64x128xbf16>, vector<128x128xbf16>, vector<64x128xf32> -> vector<64x128xf32>
    %13 = arith.addf %11, %12 : vector<64x128xf32>
    %c0_7 = arith.constant 0 : index
    %c0_8 = arith.constant 0 : index
    %14 = vector.load %arg8[%c0_7, %c0_8] : memref<64x128xf32, #tpu.memory_space<vmem>>, vector<64x128xf32>
    tpu.vector_store %arg8[%c0_7, %c0_8], %13 {strides = array<i32>} : memref<64x128xf32, #tpu.memory_space<vmem>>, vector<64x128xf32>,
    %c0_i32_9 = arith.constant 0 : i32
    %15 = arith.cmpi eq, %arg3, %c0_i32_9 : i32
    %16 = arith.extui %15 : i1 to i32
    %c0_i32_10 = arith.constant 0 : i32
    %17 = arith.cmpi ne, %16, %c0_i32_10 : i32
    scf.if %17 {
      %c0_11 = arith.constant 0 : index
      %c0_12 = arith.constant 0 : index
      %18 = vector.load %arg8[%c0_11, %c0_12] : memref<64x128xf32, #tpu.memory_space<vmem>>, vector<64x128xf32>
      %19 = arith.truncf %18 : vector<64x128xf32> to vector<64x128xbf16>
      %c0_13 = arith.constant 0 : index
      %c0_14 = arith.constant 0 : index
      %c0_15 = arith.constant 0 : index
      %20 = vector.load %arg6[%c0_13, %c0_14, %c0_15] : memref<1x64x128xbf16, #tpu.memory_space<vmem>>, vector<1x64x128xbf16>
      %21 = vector.shape_cast %20 : vector<1x64x128xbf16> to vector<64x128xbf16>
      %22 = vector.shape_cast %19 : vector<64x128xbf16> to vector<1x64x128xbf16>
      tpu.vector_store %arg6[%c0_13, %c0_14, %c0_15], %22 {strides = array<i32>} : memref<1x64x128xbf16, #tpu.memory_space<vmem>>, vector<1x64x128xbf16>,
      %cst_16 = arith.constant dense<0.000000e+00> : vector<128xf32>
      %23 = vector.multi_reduction <add>, %18, %cst_16 [0] : vector<64x128xf32> to vector<128xf32>
      %24 = vector.shape_cast %23 : vector<128xf32> to vector<1x128xf32>
      %25 = arith.mulf %18, %18 : vector<64x128xf32>
      %cst_17 = arith.constant dense<0.000000e+00> : vector<128xf32>
      %26 = vector.multi_reduction <add>, %25, %cst_17 [0] : vector<64x128xf32> to vector<128xf32>
      %27 = vector.shape_cast %26 : vector<128xf32> to vector<1x128xf32>
      %28 = tpu.iota {dimensions = array<i32: 0>} : vector<8x128xi32>
      %c4_i32 = arith.constant 4 : i32
      %29 = vector.broadcast %c4_i32 : i32 to vector<8x128xi32>
      %30 = arith.cmpi slt, %28, %29 : vector<8x128xi32>
      %31 = vector.shape_cast %24 : vector<1x128xf32> to vector<1x128xf32>
      %32 = vector.broadcast %31 : vector<1x128xf32> to vector<8x128xf32>
      %33 = vector.shape_cast %27 : vector<1x128xf32> to vector<1x128xf32>
      %34 = vector.broadcast %33 : vector<1x128xf32> to vector<8x128xf32>
      %35 = arith.select %30, %32, %34 : vector<8x128xi1>, vector<8x128xf32>
      %c0_18 = arith.constant 0 : index
      %c0_19 = arith.constant 0 : index
      %36 = vector.load %arg7[%c0_18, %c0_19] : memref<8x128xf32, #tpu.memory_space<vmem>>, vector<8x128xf32>
      tpu.vector_store %arg7[%c0_18, %c0_19], %35 {strides = array<i32>} : memref<8x128xf32, #tpu.memory_space<vmem>>, vector<8x128xf32>,
    } else {
    }
    return
  }
  func.func @transform_0(%arg0: i32, %arg1: i32, %arg2: i32, %arg3: i32) -> (i32, i32, i32) {
    %c0_i32 = arith.constant 0 : i32
    return %arg0, %arg1, %arg3 : i32, i32, i32
  }
  func.func @transform_1(%arg0: i32, %arg1: i32, %arg2: i32, %arg3: i32) -> (i32, i32, i32, i32) {
    %c0_i32 = arith.constant 0 : i32
    %c0_i32_0 = arith.constant 0 : i32
    %c0_i32_1 = arith.constant 0 : i32
    %c0_i32_2 = arith.constant 0 : i32
    return %arg0, %c0_i32, %c0_i32_0, %c0_i32_1 : i32, i32, i32, i32
  }
  func.func @transform_2(%arg0: i32, %arg1: i32, %arg2: i32, %arg3: i32) -> (i32, i32, i32) {
    %c0_i32 = arith.constant 0 : i32
    return %arg0, %arg1, %arg2 : i32, i32, i32
  }
  func.func @transform_3(%arg0: i32, %arg1: i32, %arg2: i32, %arg3: i32) -> (i32, i32) {
    %c2_i32 = arith.constant 2 : i32
    %0 = arith.muli %arg0, %c2_i32 : i32
    %1 = arith.addi %0, %arg1 : i32
    %c0_i32 = arith.constant 0 : i32
    return %1, %arg2 : i32, i32
  }
}

</mosaic_0001>

<bundles_post_ra>
// kernel: unet_innermost_forward.2
= control target key start
LH: loop header
LB: loop body
LE: loop exit
PB: predicated region body
PF: predicated region fallthrough
CT: control target
= control target key end

     0   :  { %s746_s9 = smov 0   ;;  %s748_s10 = smov 0   ;;  %s813_s0 = inlined_call_operand.vmem [shape: bf16[1,128,128], index: 0, kind: input, shape index: {}]   ;;  %s814_s1 = inlined_call_operand.vmem [shape: bf16[1,1,128,128], index: 1, kind: input, shape index: {}]   ;;  %s815_s2 = inlined_call_operand.vmem [shape: bf16[1,128,128], index: 2, kind: output, shape index: {}]  }
   0x1   :  { %s750_s11 = smov 0  }
   0x2 LB: > { %s34_s12 = sadd.s32 1, %s725_s10  ;;  %p569_p0 = scmp.ge.s32.totalorder %s729_s11, 1  ;;  %s729_s11 = sphi %s750_s11, %s12_s11   ;;  %s725_s10 = sphi %s748_s10, %s817_s10   ;;  %s721_s9 = sphi %s746_s9, %s816_s9  }
   0x3   : > { %p36_p1 = scmp.ge.s32.totalorder %s34_s12, 2  ;;  %p164_p2 = scmp.lt.s32.totalorder %s729_s11, 3 }
   0x5   : > { %s819_s12 = smov (%p36_p1, %s34_s12), 0  ;;  %p165_p3 = pnand %p569_p0, %p164_p2 }
   0x6   : > { %s570_s21 = sshll.u32 (!%p165_p3), %s721_s9, 3 }
   0x7   : > { %168 = sbr.rel (%p165_p3) target bundleno = 191 (0xbf), region = 28  ;;  %p208_p4 = scmp.lt.s32.totalorder (!%p165_p3), %s570_s21, 15 }
   0xc   : > { %v635_v0 = vld [vmem:[%s814_s1 + $0x38] sm:$0xff]  ;;  %v634_v1 = vld [vmem:[%s814_s1 + $0x30] sm:$0xff]  ;;  %v633_v2 = vld [vmem:[%s814_s1 + $0x28] sm:$0xff]  ;;  %s821_s21 = smov (!%p208_p4, %s570_s21), 15 }
   0xd   : > { %359 = vmatpush.bf16.msra.mxu0 %v635_v0  ;;  %659 = vmatpush.bf16.msra.mxu1 %v635_v0  ;;  %v632_v3 = vld [vmem:[%s814_s1 + $0x20] sm:$0xff]  ;;  %v631_v4 = vld [vmem:[%s814_s1 + $0x18] sm:$0xff]  ;;  %v630_v5 = vld [vmem:[%s814_s1 + $0x10] sm:$0xff]  ;;  %s571_s28 = sshll.u32 %s821_s21, 2 }
   0xe   : > { %660 = vmatpush.bf16.msra.mxu2 %v635_v0  ;;  %661 = vmatpush.bf16.msra.mxu3 %v635_v0  ;;  %v629_v6 = vld [vmem:[%s814_s1 + $0x8] sm:$0xff]  ;;  %v628_v7 = vld [vmem:[%s814_s1] sm:$0xff]  ;;  %s216_s5 = scalar_lea.vmem %s813_s0, %s571_s28  ;;  %s234_s8 = scalar_lea.vmem %s815_s2, %s571_s28 }
   0xf   : > { %v624_v8 = vld [vmem:[%s216_s5] sm:$0xff]  ;;  %v625_v9 = vld [vmem:[%s216_s5 + $0x8] sm:$0xff]  ;;  %v626_v10 = vld [vmem:[%s216_s5 + $0x10] sm:$0xff] }
  0x10   : > { %v627_v11 = vld [vmem:[%s216_s5 + $0x18] sm:$0xff] }
  0x11   : > { %360 = vmatpush.bf16.msra.mxu0 %v634_v1  ;;  %662 = vmatpush.bf16.msra.mxu1 %v634_v1 }
  0x12   : > { %663 = vmatpush.bf16.msra.mxu2 %v634_v1  ;;  %664 = vmatpush.bf16.msra.mxu3 %v634_v1 }
  0x15   : > { %361 = vmatpush.bf16.msra.mxu0 %v633_v2  ;;  %665 = vmatpush.bf16.msra.mxu1 %v633_v2 }
  0x16   : > { %666 = vmatpush.bf16.msra.mxu2 %v633_v2  ;;  %667 = vmatpush.bf16.msra.mxu3 %v633_v2 }
  0x19   : > { %362 = vmatpush.bf16.msra.mxu0 %v632_v3  ;;  %668 = vmatpush.bf16.msra.mxu1 %v632_v3 }
  0x1a   : > { %669 = vmatpush.bf16.msra.mxu2 %v632_v3  ;;  %670 = vmatpush.bf16.msra.mxu3 %v632_v3 }
  0x1d   : > { %363 = vmatpush.bf16.msra.mxu0 %v631_v4  ;;  %671 = vmatpush.bf16.msra.mxu1 %v631_v4 }
  0x1e   : > { %672 = vmatpush.bf16.msra.mxu2 %v631_v4  ;;  %673 = vmatpush.bf16.msra.mxu3 %v631_v4 }
  0x21   : > { %364 = vmatpush.bf16.msra.mxu0 %v630_v5  ;;  %674 = vmatpush.bf16.msra.mxu1 %v630_v5 }
  0x22   : > { %675 = vmatpush.bf16.msra.mxu2 %v630_v5  ;;  %676 = vmatpush.bf16.msra.mxu3 %v630_v5 }
  0x25   : > { %365 = vmatpush.bf16.msra.mxu0 %v629_v6  ;;  %677 = vmatpush.bf16.msra.mxu1 %v629_v6 }
  0x26   : > { %678 = vmatpush.bf16.msra.mxu2 %v629_v6  ;;  %679 = vmatpush.bf16.msra.mxu3 %v629_v6 }
  0x29   : > { %366 = vmatpush.bf16.msra.mxu0 %v628_v7  ;;  %680 = vmatpush.bf16.msra.mxu1 %v628_v7 }
  0x2a   : > { %681 = vmatpush.bf16.msra.mxu2 %v628_v7  ;;  %682 = vmatpush.bf16.msra.mxu3 %v628_v7 }
  0x2c   : > { %367 = vmatmul.bf16.vlgmr.msra.gmra.mxu0 %v624_v8  ;;  %372 = vmatmul.bf16.vlgmr.msra.gmra.mxu1 %v625_v9 }
  0x2d   : > { %377 = vmatmul.bf16.vlgmr.msra.gmra.mxu2 %v626_v10  ;;  %382 = vmatmul.bf16.vlgmr.msra.gmra.mxu3 %v627_v11 }
  0xa9   : > { %v368_v12 = vpop.f32.mrf.mxu0  ;;  %v373_v13 = vpop.f32.mrf.mxu1 }
  0xaa   : > { %v415_v18 = vmax.f32 %v368_v12, 0.0  ;;  %v417_v19 = vmax.f32 %v373_v13, 0.0 }
  0xb0   : > { %v378_v14 = vpop.f32.mrf.mxu2  ;;  %v383_v15 = vpop.f32.mrf.mxu3 }
  0xb1   : > { %v370_v16 = vpop.f32.mrf.mxu0  ;;  %v375_v17 = vpop.f32.mrf.mxu1  ;;  %v419_v26 = vmax.f32 %v378_v14, 0.0  ;;  %v421_v27 = vmax.f32 %v383_v15, 0.0 }
  0xb2   : > { %v416_v20 = vmax.f32 %v370_v16, 0.0  ;;  %v418_v21 = vmax.f32 %v375_v17, 0.0 }
  0xb4   : > { %v639_v22 = vpack.c.bf16 %v416_v20, %v415_v18  ;;  %v644_v23 = vpack.c.bf16 %v418_v21, %v417_v19 }
  0xb6   : > { %640 = vst [vmem:[%s234_s8] sm:$0xff] %v639_v22  }
  0xb7   : > { %656 = vst [vmem:[%s234_s8 + $0x8] sm:$0xff] %v644_v23  }
  0xb8   : > { %v380_v24 = vpop.f32.mrf.mxu2  ;;  %v385_v25 = vpop.f32.mrf.mxu3 }
  0xb9   : > { %v420_v28 = vmax.f32 %v380_v24, 0.0  ;;  %v422_v29 = vmax.f32 %v385_v25, 0.0 }
  0xbb   : > { %v649_v30 = vpack.c.bf16 %v420_v28, %v419_v26  ;;  %v654_v31 = vpack.c.bf16 %v422_v29, %v421_v27 }
  0xbd   : > { %657 = vst [vmem:[%s234_s8 + $0x10] sm:$0xff] %v649_v30  }
  0xbe   : > { %658 = vst [vmem:[%s234_s8 + $0x18] sm:$0xff] %v654_v31  }
  0xbf PF: > { %s12_s11 = sadd.s32 1, %s729_s11   ;;  %s816_s9 = smov %s725_s10 }
  0xc0   : > { %p9_p5 = scmp.ge.s32.totalorder %s12_s11, 4   ;;  %s817_s10 = smov %s819_s12 }
  0xc2   :  { %11 = sbr.rel (!%p9_p5) target bundleno = 2 (0x2), region = 70 }

// kernel: unet_innermost_forward.3
= control target key start
LH: loop header
LB: loop body
LE: loop exit
PB: predicated region body
PF: predicated region fallthrough
CT: control target
= control target key end

     0   :  { %s886_s12 = smov 0   ;;  %s888_s13 = smov 0   ;;  %s954_s0 = inlined_call_operand.vmem [shape: bf16[1,128,128], index: 0, kind: input, shape index: {}]   ;;  %s955_s1 = inlined_call_operand.vmem [shape: bf16[1,1,128,128], index: 1, kind: input, shape index: {}]   ;;  %s956_s2 = inlined_call_operand.vmem [shape: bf16[1,128,128], index: 2, kind: output, shape index: {0}]   ;;  %s957_s3 = inlined_call_operand.vmem [shape: f32[16,128], index: 3, kind: output, shape index: {1}]  }
   0x1   :  { %s890_s14 = smov 0  }
   0x2 LB: > { %s36_s15 = sadd.s32 1, %s860_s13  ;;  %p703_p0 = scmp.ge.s32.totalorder %s864_s14, 1  ;;  %s864_s14 = sphi %s890_s14, %s14_s14   ;;  %s860_s13 = sphi %s888_s13, %s959_s13   ;;  %s856_s12 = sphi %s886_s12, %s958_s12  }
   0x3   : > { %p38_p1 = scmp.ge.s32.totalorder %s36_s15, 2  ;;  %p198_p2 = scmp.lt.s32.totalorder %s864_s14, 3 }
   0x5   : > { %s961_s15 = smov (%p38_p1, %s36_s15), 0  ;;  %p199_p3 = pnand %p703_p0, %p198_p2 }
   0x6   : > { %s704_s24 = sshll.u32 (!%p199_p3), %s856_s12, 3  ;;  %p283_p5 = scmp.lt.s32.totalorder (!%p199_p3), %s856_s12, 1 }
   0x7   : > { %202 = sbr.rel (%p199_p3) target bundleno = 208 (0xd0), region = 28  ;;  %p253_p4 = scmp.lt.s32.totalorder (!%p199_p3), %s704_s24, 15 }
   0xc   : > { %v770_v0 = vld [vmem:[%s955_s1 + $0x38] sm:$0xff]  ;;  %v769_v1 = vld [vmem:[%s955_s1 + $0x30] sm:$0xff]  ;;  %v768_v2 = vld [vmem:[%s955_s1 + $0x28] sm:$0xff]  ;;  %s963_s24 = smov (!%p253_p4, %s704_s24), 15  ;;  %v521_v49 = vlaneseq  ;;  %s965_s12 = smov (!%p283_p5, %s856_s12), 1 }
   0xd   : > { %415 = vmatpush.bf16.msra.mxu0 %v770_v0  ;;  %794 = vmatpush.bf16.msra.mxu1 %v770_v0  ;;  %v767_v3 = vld [vmem:[%s955_s1 + $0x20] sm:$0xff]  ;;  %v766_v4 = vld [vmem:[%s955_s1 + $0x18] sm:$0xff]  ;;  %v765_v5 = vld [vmem:[%s955_s1 + $0x10] sm:$0xff]  ;;  %s705_s4 = sshll.u32 %s963_s24, 2  ;;  %s708_s17 = sshll.u32 %s965_s12, 3 }
   0xe   : > { %795 = vmatpush.bf16.msra.mxu2 %v770_v0  ;;  %796 = vmatpush.bf16.msra.mxu3 %v770_v0  ;;  %v764_v6 = vld [vmem:[%s955_s1 + $0x8] sm:$0xff]  ;;  %v763_v7 = vld [vmem:[%s955_s1] sm:$0xff]  ;;  %s261_s9 = scalar_lea.vmem %s954_s0, %s705_s4  ;;  %s279_s16 = scalar_lea.vmem %s956_s2, %s705_s4  ;;  %v522_v54 = vshrl.u32 %v521_v49, 7 }
   0xf   : > { %v759_v8 = vld [vmem:[%s261_s9] sm:$0xff]  ;;  %v760_v9 = vld [vmem:[%s261_s9 + $0x8] sm:$0xff]  ;;  %v761_v10 = vld [vmem:[%s261_s9 + $0x10] sm:$0xff]  ;;  %s289_s20 = scalar_lea.vmem %s957_s3, %s708_s17 }
  0x10   : > { %v762_v11 = vld [vmem:[%s261_s9 + $0x18] sm:$0xff]  ;;  %vm523_vm0 = vcmp.lt.s32.totalorder %v522_v54, 4 }
  0x11   : > { %416 = vmatpush.bf16.msra.mxu0 %v769_v1  ;;  %797 = vmatpush.bf16.msra.mxu1 %v769_v1 }
  0x12   : > { %798 = vmatpush.bf16.msra.mxu2 %v769_v1  ;;  %799 = vmatpush.bf16.msra.mxu3 %v769_v1 }
  0x15   : > { %417 = vmatpush.bf16.msra.mxu0 %v768_v2  ;;  %800 = vmatpush.bf16.msra.mxu1 %v768_v2 }
  0x16   : > { %801 = vmatpush.bf16.msra.mxu2 %v768_v2  ;;  %802 = vmatpush.bf16.msra.mxu3 %v768_v2 }
  0x19   : > { %418 = vmatpush.bf16.msra.mxu0 %v767_v3  ;;  %803 = vmatpush.bf16.msra.mxu1 %v767_v3 }
  0x1a   : > { %804 = vmatpush.bf16.msra.mxu2 %v767_v3  ;;  %805 = vmatpush.bf16.msra.mxu3 %v767_v3 }
  0x1d   : > { %419 = vmatpush.bf16.msra.mxu0 %v766_v4  ;;  %806 = vmatpush.bf16.msra.mxu1 %v766_v4 }
  0x1e   : > { %807 = vmatpush.bf16.msra.mxu2 %v766_v4  ;;  %808 = vmatpush.bf16.msra.mxu3 %v766_v4 }
  0x21   : > { %420 = vmatpush.bf16.msra.mxu0 %v765_v5  ;;  %809 = vmatpush.bf16.msra.mxu1 %v765_v5 }
  0x22   : > { %810 = vmatpush.bf16.msra.mxu2 %v765_v5  ;;  %811 = vmatpush.bf16.msra.mxu3 %v765_v5 }
  0x25   : > { %421 = vmatpush.bf16.msra.mxu0 %v764_v6  ;;  %812 = vmatpush.bf16.msra.mxu1 %v764_v6 }
  0x26   : > { %813 = vmatpush.bf16.msra.mxu2 %v764_v6  ;;  %814 = vmatpush.bf16.msra.mxu3 %v764_v6 }
  0x29   : > { %422 = vmatpush.bf16.msra.mxu0 %v763_v7  ;;  %815 = vmatpush.bf16.msra.mxu1 %v763_v7 }
  0x2a   : > { %816 = vmatpush.bf16.msra.mxu2 %v763_v7  ;;  %817 = vmatpush.bf16.msra.mxu3 %v763_v7 }
  0x2c   : > { %423 = vmatmul.bf16.vlgmr.msra.gmra.mxu0 %v759_v8  ;;  %428 = vmatmul.bf16.vlgmr.msra.gmra.mxu1 %v760_v9 }
  0x2d   : > { %433 = vmatmul.bf16.vlgmr.msra.gmra.mxu2 %v761_v10  ;;  %438 = vmatmul.bf16.vlgmr.msra.gmra.mxu3 %v762_v11 }
  0xa9   : > { %v424_v12 = vpop.f32.mrf.mxu0  ;;  %v429_v13 = vpop.f32.mrf.mxu1 }
  0xaa   : > { %v500_v16 = vmul.f32 %v424_v12, %v424_v12  ;;  %v502_v23 = vmul.f32 %v429_v13, %v429_v13 }
  0xb0   : > { %v434_v14 = vpop.f32.mrf.mxu2  ;;  %v439_v15 = vpop.f32.mrf.mxu3 }
  0xb1   : > { %v426_v17 = vpop.f32.mrf.mxu0  ;;  %v431_v18 = vpop.f32.mrf.mxu1  ;;  %v504_v29 = vmul.f32 %v434_v14, %v434_v14  ;;  %v506_v39 = vmul.f32 %v439_v15, %v439_v15 }
  0xb2   : > { %v774_v19 = vpack.c.bf16 %v426_v17, %v424_v12  ;;  %v487_v20 = vadd.f32 %v426_v17, %v424_v12  ;;  %v501_v21 = vmul.f32 %v426_v17, %v426_v17  ;;  %v779_v22 = vpack.c.bf16 %v431_v18, %v429_v13 }
  0xb3   : > { %v503_v27 = vmul.f32 %v431_v18, %v431_v18 }
  0xb4   : > { %775 = vst [vmem:[%s279_s16] sm:$0xff] %v774_v19   ;;  %v508_v24 = vadd.f32 %v501_v21, %v500_v16  ;;  %v488_v25 = vadd.f32 %v487_v20, %v429_v13 }
  0xb5   : > { %791 = vst [vmem:[%s279_s16 + $0x8] sm:$0xff] %v779_v22  }
  0xb6   : > { %v489_v26 = vadd.f32 %v488_v25, %v431_v18  ;;  %v509_v28 = vadd.f32 %v508_v24, %v502_v23 }
  0xb8   : > { %v510_v30 = vadd.f32 %v509_v28, %v503_v27  ;;  %v436_v31 = vpop.f32.mrf.mxu2  ;;  %v490_v32 = vadd.f32 %v489_v26, %v434_v14  ;;  %v441_v33 = vpop.f32.mrf.mxu3 }
  0xb9   : > { %v784_v34 = vpack.c.bf16 %v436_v31, %v434_v14  ;;  %v789_v35 = vpack.c.bf16 %v441_v33, %v439_v15  ;;  %v505_v37 = vmul.f32 %v436_v31, %v436_v31  ;;  %v507_v43 = vmul.f32 %v441_v33, %v441_v33 }
  0xba   : > { %v491_v36 = vadd.f32 %v490_v32, %v436_v31  ;;  %v511_v38 = vadd.f32 %v510_v30, %v504_v29 }
  0xbb   : > { %792 = vst [vmem:[%s279_s16 + $0x10] sm:$0xff] %v784_v34  }
  0xbc   : > { %v512_v40 = vadd.f32 %v511_v38, %v505_v37  ;;  %793 = vst [vmem:[%s279_s16 + $0x18] sm:$0xff] %v789_v35   ;;  %v492_v41 = vadd.f32 %v491_v36, %v439_v15 }
  0xbe   : > { %v493_v42 = vadd.f32 %v492_v41, %v441_v33  ;;  %v513_v44 = vadd.f32 %v512_v40, %v506_v39 }
  0xc0   : > { %v494_v45 = vrot.slane %v493_v42, 4  ;;  %v514_v46 = vadd.f32 %v513_v44, %v507_v43 }
  0xc2   : > { %v495_v47 = vadd.f32 %v494_v45, %v493_v42  ;;  %v515_v48 = vrot.slane %v514_v46, 4 }
  0xc4   : > { %v496_v50 = vrot.slane %v495_v47, 2  ;;  %v516_v51 = vadd.f32 %v515_v48, %v514_v46 }
  0xc6   : > { %v497_v52 = vadd.f32 %v496_v50, %v495_v47  ;;  %v517_v53 = vrot.slane %v516_v51, 2 }
  0xc8   : > { %v498_v55 = vrot.slane %v497_v52, 1  ;;  %v518_v56 = vadd.f32 %v517_v53, %v516_v51 }
  0xca   : > { %v519_v57 = vrot.slane %v518_v56, 1  ;;  %v499_v58 = vadd.f32 %v498_v55, %v497_v52 }
  0xcc   : > { %v520_v59 = vadd.f32 %v519_v57, %v518_v56 }
  0xce   : > { %v524_v60 = vsel %vm523_vm0, %v499_v58, %v520_v59 }
  0xcf   : > { %525 = vst [vmem:[%s289_s20] sm:$0xff] %v524_v60 }
  0xd0 PF: > { %s14_s14 = sadd.s32 1, %s864_s14   ;;  %s958_s12 = smov %s860_s13 }
  0xd1   : > { %p11_p6 = scmp.ge.s32.totalorder %s14_s14, 4   ;;  %s959_s13 = smov %s961_s15 }
  0xd3   :  { %13 = sbr.rel (!%p11_p6) target bundleno = 2 (0x2), region = 82 }

</bundles_post_ra>
